<compile_context>
chip_gen: v7x
topology: tpu7x:2x2x1
jax: 0.10.0
libtpu: 0.0.40
codegen_flags: <defaults>
</compile_context>

<pallas_src>
import jax
import jax.numpy as jnp
from jax.experimental import pallas as pl
from jax.experimental.pallas import tpu as pltpu

HIDDEN = 24
OUT = 10
HIDDEN_PAD = 128  # lane-dense intermediate (zero-padded; exact same math)
LANES = 128


def _round_up(n, m):
    return ((n + m - 1) // m) * m


def _choose_row_tile(B, D, x_itemsize, out_itemsize, *,
                     vmem_budget_bytes=12 << 20, min_steps=8, max_rows=16384):
    """Pick the batch-row tile from an explicit VMEM budget.

    Counts the true (lane-padded) double-buffered footprint of the streamed
    x / out blocks plus the resident weights, keeps tb a multiple of 8, and
    caps tb so the grid has >= min_steps steps (v7x megacore split) whenever
    the batch is large enough.
    """
    d_pad = _round_up(max(D, 1), LANES)
    o_pad = LANES  # OUT=10 is lane-padded to 128 inside VMEM
    # Double-buffered streaming cost per tile row (x in + out back).
    per_row = 2 * (d_pad * x_itemsize + o_pad * out_itemsize)
    # Resident weights/biases (conservatively double-buffered).
    resident = 2 * (d_pad * HIDDEN_PAD * 2      # w1 bf16
                    + HIDDEN_PAD * LANES * 2    # w2 bf16 (lane-padded)
                    + 2 * 8 * LANES * 4)        # b1/b2 f32 (sublane-padded)
    budget = max(vmem_budget_bytes - resident, 1 << 20)

    tb_vmem = max(8, (budget // per_row) // 8 * 8)
    tb_split = max(8, _round_up(pl.cdiv(B, min_steps), 8))
    tb_batch = max(8, _round_up(B, 8))
    return max(8, min(tb_vmem, tb_split, tb_batch, max_rows))


def classifier_kernel(x_ref, w1_ref, b1_ref, w2_ref, b2_ref, o_ref):
    # x:  (TB, D)   caller dtype   w1: (D, 128) bf16   b1: (1, 128) f32
    # w2: (128, 10) bf16           b2: (1, 10)  f32    o:  (TB, 10) out_dtype
    x = x_ref[...].astype(jnp.bfloat16)          # in-kernel cast (VPU, free)
    h = jnp.dot(x, w1_ref[...], preferred_element_type=jnp.float32)
    h = h + b1_ref[...]                          # f32 bias add, broadcast (1,128)
    h = jnp.where(h > 0, h, 0.01 * h)            # LeakyReLU(0.01) in f32 on VPU
    out = jnp.dot(h.astype(jnp.bfloat16), w2_ref[...],
                  preferred_element_type=jnp.float32)
    o_ref[...] = (out + b2_ref[...]).astype(o_ref.dtype)


def classifier_forward(x, w1, b1, w2, b2, *, block_rows=None,
                       out_dtype=jnp.float32):
    """x: (B, D); w1: (D, 24); b1: (1, 24); w2: (24, 10); b2: (1, 10)."""
    B, D = x.shape
    H = w1.shape[1]
    O = w2.shape[1]

    x_itemsize = jnp.dtype(x.dtype).itemsize
    out_itemsize = jnp.dtype(out_dtype).itemsize

    if block_rows is None:
        tb = _choose_row_tile(B, D, x_itemsize, out_itemsize)
    else:
        tb = max(8, _round_up(min(block_rows, _round_up(B, 8)), 8))

    grid = (pl.cdiv(B, tb),)   # ragged last tile handled by Pallas masking

    # Weights/biases are tiny and grid-resident: pad hidden 24->128 and cast
    # to bf16 once. x itself is NOT touched in the wrapper.
    w1p = jnp.pad(w1, ((0, 0), (0, HIDDEN_PAD - H))).astype(jnp.bfloat16)
    b1p = jnp.pad(b1, ((0, 0), (0, HIDDEN_PAD - H))).astype(jnp.float32)
    w2p = jnp.pad(w2, ((0, HIDDEN_PAD - H), (0, 0))).astype(jnp.bfloat16)
    b2p = b2.astype(jnp.float32)

    cost = pl.CostEstimate(
        flops=2 * B * (D * HIDDEN_PAD + HIDDEN_PAD * O),
        bytes_accessed=(B * D * x_itemsize          # x streamed in its dtype
                        + B * O * out_itemsize      # output writeback
                        + D * HIDDEN_PAD * 2        # w1 bf16
                        + HIDDEN_PAD * O * 2        # w2 bf16
                        + HIDDEN_PAD * 4 + O * 4),  # biases f32
        transcendentals=0,
    )

    return pl.pallas_call(
        classifier_kernel,
        out_shape=jax.ShapeDtypeStruct((B, O), out_dtype),
        grid=grid,
        in_specs=[
            pl.BlockSpec((tb, D), lambda i: (i, 0)),           # x: streamed
            pl.BlockSpec((D, HIDDEN_PAD), lambda i: (0, 0)),   # w1: resident
            pl.BlockSpec((1, HIDDEN_PAD), lambda i: (0, 0)),   # b1: resident
            pl.BlockSpec((HIDDEN_PAD, O), lambda i: (0, 0)),   # w2: resident
            pl.BlockSpec((1, O), lambda i: (0, 0)),            # b2: resident
        ],
        out_specs=pl.BlockSpec((tb, O), lambda i: (i, 0)),
        compiler_params=pltpu.CompilerParams(
            dimension_semantics=("parallel",),   # v7x: shard batch over 2 TCs
            vmem_limit_bytes=32 << 20,           # safe on v5e/v6e/v7x
        ),
        cost_estimate=cost,
    )(x, w1p, b1p, w2p, b2p)


def init_params(key, inp_size, hidden=HIDDEN, out=OUT, dtype=jnp.float32):
    # Mimics nn.Linear's uniform(-1/sqrt(fan_in), 1/sqrt(fan_in)) init.
    k1, k2, k3, k4 = jax.random.split(key, 4)
    lim1 = 1.0 / (inp_size ** 0.5)
    lim2 = 1.0 / (hidden ** 0.5)
    w1 = jax.random.uniform(k1, (inp_size, hidden), dtype, -lim1, lim1)
    b1 = jax.random.uniform(k2, (1, hidden), dtype, -lim1, lim1)
    w2 = jax.random.uniform(k3, (hidden, out), dtype, -lim2, lim2)
    b2 = jax.random.uniform(k4, (1, out), dtype, -lim2, lim2)
    return w1, b1, w2, b2


if __name__ == "__main__":
    key = jax.random.PRNGKey(0)
    kx, kp = jax.random.split(key)

    batch = 200                 # not a multiple of the row tile -> exercises
                                # the ragged last grid step (no batch padding)
    classifier_inp_size = 32    # opt.classifierInpSize

    x = jax.random.normal(kx, (batch, classifier_inp_size), jnp.float32)
    w1, b1, w2, b2 = init_params(kp, classifier_inp_size)

    out = classifier_forward(x, w1, b1, w2, b2)   # auto tile -> multi-step grid
    out = jax.block_until_ready(out)
    assert out.shape == (batch, OUT)
    assert out.dtype == jnp.float32

    # Reference 1: mirror the kernel's bf16-matmul / f32-elementwise math.
    xb = x.astype(jnp.bfloat16)
    w1b = w1.astype(jnp.bfloat16)
    w2b = w2.astype(jnp.bfloat16)
    h = jnp.dot(xb, w1b, preferred_element_type=jnp.float32) + b1
    h = jnp.where(h > 0, h, 0.01 * h)
    ref_bf16 = jnp.dot(h.astype(jnp.bfloat16), w2b,
                       preferred_element_type=jnp.float32) + b2
    assert jnp.allclose(out, ref_bf16, atol=1e-3, rtol=1e-3)

    # Reference 2: pure-f32 PyTorch semantics (loose tolerance: bf16 MXU inputs
    # are an explicit contract with the caller).
    h32 = x @ w1 + b1
    h32 = jnp.where(h32 > 0, h32, 0.01 * h32)
    ref_f32 = h32 @ w2 + b2
    assert jnp.allclose(out, ref_f32, atol=5e-2, rtol=5e-2)

    # Also exercise an explicit block_rows override (tiny tile, many steps).
    out2 = jax.block_until_ready(
        classifier_forward(x, w1, b1, w2, b2, block_rows=64))
    assert jnp.allclose(out2, ref_bf16, atol=1e-3, rtol=1e-3)

    print("KERNEL_OK")
</pallas_src>

<mosaic_0001>
module attributes {stable_mosaic.version = 11 : i64} {
  func.func @classifier_kernel(%arg0: i32, %arg1: memref<32x32xf32, #tpu.memory_space<vmem>>, %arg2: memref<32x128xbf16, #tpu.memory_space<vmem>>, %arg3: memref<1x128xf32, #tpu.memory_space<vmem>>, %arg4: memref<128x10xbf16, #tpu.memory_space<vmem>>, %arg5: memref<1x10xf32, #tpu.memory_space<vmem>>, %arg6: memref<32x10xf32, #tpu.memory_space<vmem>>) attributes {dimension_semantics = [#tpu.dimension_semantics<parallel>], iteration_bounds = array<i64: 7>, scalar_prefetch = 0 : i64, scratch_operands = 0 : i64, tpu.core_type = #tpu.core_type<tc>, window_params = [{transform_indices = @transform_0, window_bounds = array<i64: 32, 32>}, {pipeline_mode = #tpu.pipeline_mode<synchronous>, transform_indices = @transform_1, window_bounds = array<i64: 32, 128>}, {pipeline_mode = #tpu.pipeline_mode<synchronous>, transform_indices = @transform_2, window_bounds = array<i64: 1, 128>}, {pipeline_mode = #tpu.pipeline_mode<synchronous>, transform_indices = @transform_3, window_bounds = array<i64: 128, 10>}, {pipeline_mode = #tpu.pipeline_mode<synchronous>, transform_indices = @transform_4, window_bounds = array<i64: 1, 10>}, {transform_indices = @transform_5, window_bounds = array<i64: 32, 10>}]} {
    %c0 = arith.constant 0 : index
    %c0_0 = arith.constant 0 : index
    %0 = vector.load %arg1[%c0, %c0_0] : memref<32x32xf32, #tpu.memory_space<vmem>>, vector<32x32xf32>
    %1 = arith.truncf %0 : vector<32x32xf32> to vector<32x32xbf16>
    %c0_1 = arith.constant 0 : index
    %c0_2 = arith.constant 0 : index
    %2 = vector.load %arg2[%c0_1, %c0_2] : memref<32x128xbf16, #tpu.memory_space<vmem>>, vector<32x128xbf16>
    %cst = arith.constant dense<0.000000e+00> : vector<32x128xf32>
    %3 = tpu.matmul %1, %2, %cst {dimension_numbers = #tpu.dot_dimension_numbers<[1], [0], [0], [1], [0, 0, 1, 1], [], []>} : vector<32x32xbf16>, vector<32x128xbf16>, vector<32x128xf32> -> vector<32x128xf32>
    %c0_3 = arith.constant 0 : index
    %c0_4 = arith.constant 0 : index
    %4 = vector.load %arg3[%c0_3, %c0_4] : memref<1x128xf32, #tpu.memory_space<vmem>>, vector<1x128xf32>
    %5 = vector.broadcast %4 : vector<1x128xf32> to vector<32x128xf32>
    %6 = arith.addf %3, %5 : vector<32x128xf32>
    %cst_5 = arith.constant 0.000000e+00 : f32
    %7 = vector.broadcast %cst_5 : f32 to vector<32x128xf32>
    %8 = arith.cmpf ogt, %6, %7 : vector<32x128xf32>
    %cst_6 = arith.constant 0.00999999977 : f32
    %9 = vector.broadcast %cst_6 : f32 to vector<32x128xf32>
    %10 = arith.mulf %9, %6 : vector<32x128xf32>
    %11 = arith.select %8, %6, %10 : vector<32x128xi1>, vector<32x128xf32>
    %12 = arith.truncf %11 : vector<32x128xf32> to vector<32x128xbf16>
    %c0_7 = arith.constant 0 : index
    %c0_8 = arith.constant 0 : index
    %13 = vector.load %arg4[%c0_7, %c0_8] : memref<128x10xbf16, #tpu.memory_space<vmem>>, vector<128x10xbf16>
    %cst_9 = arith.constant dense<0.000000e+00> : vector<32x10xf32>
    %14 = tpu.matmul %12, %13, %cst_9 {dimension_numbers = #tpu.dot_dimension_numbers<[1], [0], [0], [1], [0, 0, 1, 1], [], []>} : vector<32x128xbf16>, vector<128x10xbf16>, vector<32x10xf32> -> vector<32x10xf32>
    %c0_10 = arith.constant 0 : index
    %c0_11 = arith.constant 0 : index
    %15 = vector.load %arg5[%c0_10, %c0_11] : memref<1x10xf32, #tpu.memory_space<vmem>>, vector<1x10xf32>
    %16 = vector.broadcast %15 : vector<1x10xf32> to vector<32x10xf32>
    %17 = arith.addf %14, %16 : vector<32x10xf32>
    %c0_12 = arith.constant 0 : index
    %c0_13 = arith.constant 0 : index
    %18 = vector.load %arg6[%c0_12, %c0_13] : memref<32x10xf32, #tpu.memory_space<vmem>>, vector<32x10xf32>
    tpu.vector_store %arg6[%c0_12, %c0_13], %17 {strides = array<i32>} : memref<32x10xf32, #tpu.memory_space<vmem>>, vector<32x10xf32>,
    return
  }
  func.func @transform_0(%arg0: i32) -> (i32, i32) {
    %c0_i32 = arith.constant 0 : i32
    %c0_i32_0 = arith.constant 0 : i32
    return %arg0, %c0_i32 : i32, i32
  }
  func.func @transform_1(%arg0: i32) -> (i32, i32) {
    %c0_i32 = arith.constant 0 : i32
    %c0_i32_0 = arith.constant 0 : i32
    %c0_i32_1 = arith.constant 0 : i32
    return %c0_i32, %c0_i32_0 : i32, i32
  }
  func.func @transform_2(%arg0: i32) -> (i32, i32) {
    %c0_i32 = arith.constant 0 : i32
    %c0_i32_0 = arith.constant 0 : i32
    %c0_i32_1 = arith.constant 0 : i32
    return %c0_i32, %c0_i32_0 : i32, i32
  }
  func.func @transform_3(%arg0: i32) -> (i32, i32) {
    %c0_i32 = arith.constant 0 : i32
    %c0_i32_0 = arith.constant 0 : i32
    %c0_i32_1 = arith.constant 0 : i32
    return %c0_i32, %c0_i32_0 : i32, i32
  }
  func.func @transform_4(%arg0: i32) -> (i32, i32) {
    %c0_i32 = arith.constant 0 : i32
    %c0_i32_0 = arith.constant 0 : i32
    %c0_i32_1 = arith.constant 0 : i32
    return %c0_i32, %c0_i32_0 : i32, i32
  }
  func.func @transform_5(%arg0: i32) -> (i32, i32) {
    %c0_i32 = arith.constant 0 : i32
    %c0_i32_0 = arith.constant 0 : i32
    return %arg0, %c0_i32 : i32, i32
  }
}

</mosaic_0001>

<bundles_post_ra>
// kernel: tpu_custom_call.1
= control target key start
LH: loop header
LB: loop body
LE: loop exit
PB: predicated region body
PF: predicated region fallthrough
CT: control target
= control target key end

     0   :  { %s997_s18 = smov 0   ;;  %s999_s19 = smov 0   ;;  %s1133_s0 = inlined_call_operand.vmem [shape: f32[200,32], index: 0, kind: input, shape index: {}]   ;;  %s1134_s1 = inlined_call_operand.vmem [shape: bf16[32,128], index: 1, kind: input, shape index: {}]   ;;  %s1135_s2 = inlined_call_operand.vmem [shape: f32[1,128], index: 2, kind: input, shape index: {}]   ;;  %s1136_s3 = inlined_call_operand.vmem [shape: bf16[128,10], index: 3, kind: input, shape index: {}]   ;;  %s1137_s4 = inlined_call_operand.vmem [shape: f32[1,10], index: 4, kind: input, shape index: {}]   ;;  %s1138_s5 = inlined_call_operand.vmem [shape: f32[200,10], index: 5, kind: output, shape index: {}]  }
   0x1   :  { %s1001_s20 = smov 0  }
   0x2 LB: > { %s1010_s21 = sadd.s32 4294967295, %s933_s20   ;;  %s1012_s22 = sadd.s32 1, %s933_s20   ;;  %s933_s20 = sphi %s1001_s20, %s1145_s20   ;;  %s929_s19 = sphi %s999_s19, %s1144_s19   ;;  %s925_s18 = sphi %s997_s18, %s1143_s18  }
   0x3   : > { %s129_s23 = ssub.s32 %s933_s20, %s1012_s22  ;;  %s132_s24 = sadd.s32 1, %s929_s19 }
   0x4   : > { %p130_p0 = scmp.eq.s32.totalorder %s129_s23, 0  ;;  %p142_p1 = scmp.ne.s32.totalorder %s929_s19, %s925_s18 }
   0x5   : > { %p143_p2 = scmp.eq.s32.totalorder %s1010_s21, 6  ;;  %p701_p3 = scmp.ge.s32.totalorder %s933_s20, 1 }
   0x6   : > { %s1020_s25 = scalar_select %p130_p0, %s929_s19, %s132_s24  }
   0x7   : > { %p1022_p4 = por %p143_p2, %p142_p1  ;;  %p196_p5 = scmp.lt.s32.totalorder %s933_s20, 8 }
   0x9   : > { %p197_p6 = pnand %p701_p3, %p196_p5 }
   0xa   : > { %v869_v0 = vld [vmem:[%s1134_s1] sm:$0xff] (!%p197_p6)   ;;  %s1030_s29 = sshll.u32 (!%p197_p6), %s1010_s21, 2  ;;  %v870_v1 = vld [vmem:[%s1134_s1 + $0x8] sm:$0xff] (!%p197_p6)   ;;  %v873_v4 = vld [vmem:[%s1136_s3 + $0x10] sm:$0xff] (!%p197_p6)   ;;  %vm276_vm0 = vcmask (!%p197_p6), 261120   ;;  %vm466_vm5 = vcmask (!%p197_p6), 80896  }
   0xb   : > { %200 = sbr.rel (%p197_p6) target bundleno = 516 (0x204), region = 40  ;;  %p232_p7 = scmp.lt.s32.totalorder (!%p197_p6), %s1030_s29, 24  ;;  %753 = vmatprep.subr.bf16.mxu0 (!%p197_p6), %v869_v0  ;;  %v871_v2 = vld [vmem:[%s1136_s3] sm:$0xff] (!%p197_p6)   ;;  %v872_v3 = vld [vmem:[%s1136_s3 + $0x8] sm:$0xff] (!%p197_p6)   ;;  %v874_v11 = vld [vmem:[%s1136_s3 + $0x18] sm:$0xff] (!%p197_p6)  }
   0xc   : > { %754 = vmatpush3.bf16.msra.mxu0 (!%p197_p6), %v869_v0  ;;  %761 = vmatprep.subr.bf16.mxu1 (!%p197_p6), %v871_v2  ;;  %v875_v12 = vld [vmem:[%s1136_s3 + $0x20] sm:$0xff] (!%p197_p6)   ;;  %v876_v13 = vld [vmem:[%s1136_s3 + $0x28] sm:$0xff] (!%p197_p6)   ;;  %v877_v14 = vld [vmem:[%s1136_s3 + $0x30] sm:$0xff] (!%p197_p6)  }
   0xd   : > { %755 = vmatprep.subr.bf16.mxu0 (!%p197_p6), %v870_v1  ;;  %762 = vmatpush3.bf16.msra.mxu1 (!%p197_p6), %v871_v2  ;;  %v878_v15 = vld [vmem:[%s1136_s3 + $0x38] sm:$0xff] (!%p197_p6)   ;;  %v705_v16 = vld [vmem:[%s1135_s2] ss:$0 sm:$0xff] (!%p197_p6) }
   0xe   : > { %763 = vmatprep.subr.bf16.mxu1 (!%p197_p6), %v872_v3  ;;  %v710_v35 = vld [vmem:[%s1137_s4] ss:$0 sm:$0xff] (!%p197_p6) }
  0x10   : > { %756 = vmatpush3.bf16.msra.mxu0 (!%p197_p6), %v870_v1 }
  0x11   : > { %764 = vmatpush3.bf16.msra.mxu1 (!%p197_p6), %v872_v3 }
  0x12   : > { %s233_s9 = scalar_select %p232_p7, %s1030_s29, 24  ;;  %765 = vmatprep.subr.bf16.mxu1 %v873_v4 }
  0x13   : > { %s736_s17 = sshll.u32 (%p1022_p4), %s1010_s21, 5 }
  0x14   : > { %s704_s12 = sshll.u32 %s233_s9, 3  ;;  %s1084_s24 = scalar_lea.vmem (%p1022_p4), %s1138_s5, %s736_s17  }
  0x15   : > { %s235_s15 = scalar_lea.vmem %s1133_s0, %s704_s12  ;;  %766 = vmatpush3.bf16.msra.mxu1 %v873_v4  ;;  %s224_s12 = sand.u32 1, %s925_s18  }
  0x16   : > { %v247_v5 = vld [vmem:[%s235_s15] sm:$0xff]  ;;  %v248_v6 = vld [vmem:[%s235_s15 + $0x8] sm:$0xff]  ;;  %v249_v7 = vld [vmem:[%s235_s15 + $0x10] sm:$0xff]  ;;  %767 = vmatprep.subr.bf16.mxu1 %v874_v11  ;;  %s702_s13 = sshll.u32 %s224_s12, 5  ;;  %s479_s18 = ssub.s32 (%p1022_p4), 25, %s1030_s29 }
  0x17   : > { %v251_v8 = vpack.c.bf16 %v248_v6, %v247_v5  ;;  %v250_v9 = vld [vmem:[%s235_s15 + $0x18] sm:$0xff]  ;;  %s1071_s16 = scalar_lea.vmem [#allocation2], %s702_s13   ;;  %p480_p8 = scmp.lt.s32.totalorder (%p1022_p4), %s479_s18, 4 }
  0x18   : > { %v252_v10 = vpack.c.bf16 %v250_v9, %v249_v7 }
  0x19   : > { %757 = vmatprep.mubr.msk.bf16.mxu0 %vm276_vm0, %v251_v8  ;;  %768 = vmatpush3.bf16.msra.mxu1 %v874_v11 }
  0x1a   : > { %758 = vmatmul.mubr.msk.bf16.vlgmr.msra.gmra.mrb[0].mxu0 %vm276_vm0, %v252_v10  ;;  %769 = vmatprep.subr.bf16.mxu1 %v875_v12 }
  0x1d   : > { %770 = vmatpush3.bf16.msra.mxu1 %v875_v12 }
  0x1e   : > { %771 = vmatprep.subr.bf16.mxu1 %v876_v13 }
  0x21   : > { %772 = vmatpush3.bf16.msra.mxu1 %v876_v13 }
  0x22   : > { %773 = vmatprep.subr.bf16.mxu1 %v877_v14 }
  0x25   : > { %774 = vmatpush3.bf16.msra.mxu1 %v877_v14 }
  0x26   : > { %775 = vmatprep.subr.bf16.mxu1 %v878_v15 }
  0x29   : > { %776 = vmatpush3.bf16.msra.mxu1 %v878_v15 }
  0xed   : > { %v759_v17 = vpop.f32.mrb[0].mxu0 }
  0xee   : > { %v326_v18 = vadd.f32 %v759_v17, %v705_v16  ;;  %v317_v19 = vpop.f32.mrb[1].mxu0 }
  0xef   : > { %v318_v20 = vadd.f32 %v705_v16, %v317_v19  ;;  %v760_v21 = vpop.f32.mrb[2].mxu0 }
  0xf0   : > { %v338_v22 = vmul.f32 0.01, %v326_v18  ;;  %v329_v23 = vadd.f32 %v760_v21, %v705_v16  ;;  %v320_v24 = vpop.f32.mrb[3].mxu0  ;;  %vm334_vm1 = vcmp.gt.f32.partialorder %v326_v18, 0.0 }
  0xf1   : > { %v336_v25 = vmul.f32 0.01, %v318_v20  ;;  %v321_v26 = vadd.f32 %v705_v16, %v320_v24  ;;  %vm332_vm3 = vcmp.gt.f32.partialorder %v318_v20, 0.0 }
  0xf2   : > { %vm335_vm2 = vcmp.gt.f32.partialorder %v329_v23, 0.0  ;;  %v339_v27 = vmul.f32 0.01, %v329_v23  ;;  %v342_v29 = vsel %vm334_vm1, %v326_v18, %v338_v22 }
  0xf3   : > { %v337_v28 = vmul.f32 0.01, %v321_v26  ;;  %vm333_vm4 = vcmp.gt.f32.partialorder %v321_v26, 0.0  ;;  %v340_v31 = vsel %vm332_vm3, %v318_v20, %v336_v25 }
  0xf4   : > { %v343_v30 = vsel %vm335_vm2, %v329_v23, %v339_v27 }
  0xf5   : > { %v341_v32 = vsel %vm333_vm4, %v321_v26, %v337_v28  ;;  %v345_v33 = vpack.c.bf16 %v343_v30, %v342_v29 }
  0xf6   : > { %v344_v34 = vpack.c.bf16 %v341_v32, %v340_v31 }
  0xf8   : > { %777 = vmatprep.mubr.bf16.mxu1 %v344_v34 }
  0xf9   : > { %778 = vmatmul.mubr.bf16.vlgmr.msra.gmra.mrb[0].mxu1 %v345_v33 }
 0x1cc   : > { %v779_v36 = vpop.f32.mrb[0].mxu1  ;;  %477 = sbr.rel (!%p1022_p4) target bundleno = 516 (0x204), region = 44 }
 0x1cd   : > { %v460_v37 = vadd.f32 %v779_v36, %v710_v35  ;;  %v451_v38 = vpop.f32.mrb[1].mxu1 }
 0x1ce   : > { %v452_v39 = vadd.f32 %v710_v35, %v451_v38  ;;  %v780_v40 = vpop.f32.mrb[2].mxu1 }
 0x1cf   : > { %469 = vst.msk [vmem:[%s1071_s16 + $0x10] sm:$0xff] %vm466_vm5, %v460_v37  ;;  %v463_v41 = vadd.f32 %v780_v40, %v710_v35  ;;  %v454_v42 = vpop.f32.mrb[3].mxu1 }
 0x1d0   : > { %467 = vst.msk [vmem:[%s1071_s16] sm:$0xff] %vm466_vm5, %v452_v39  ;;  %v455_v43 = vadd.f32 %v710_v35, %v454_v42 }
 0x1d1   : > { %470 = vst.msk [vmem:[%s1071_s16 + $0x18] sm:$0xff] %vm466_vm5, %v463_v41 }
 0x1d2   : > { %468 = vst.msk [vmem:[%s1071_s16 + $0x8] sm:$0xff] %vm466_vm5, %v455_v43 }
 0x1d3   : > { %s1147_s18 = smov (!%p480_p8, %s479_s18), 4 }
 0x1d4   : > { %s721_s27 = sshll.u32 %s1147_s18, 7 }
 0x1d5   : > { %p724_p9 = scmp.eq.s32.totalorder %s721_s27, 0 }
 0x1d6   : > { %s1090_s28 = sshrl.u32 (!%p724_p9), %s1147_s18, 2 }
 0x1d7   : > { %488 = sbr.rel (%p724_p9) target bundleno = 516 (0x204), region = 48  ;;  %p725_p10 = scmp.le.s32.totalorder (!%p724_p9), %s1090_s28, 0 }
 0x1de   : > { %654 = sbr.rel (%p725_p10) target bundleno = 495 (0x1ef), region = 124  ;;  %s1140_s21 = smov (!%p725_p10), %s1084_s24 }
 0x1df   : > { %s1141_s26 = smov (!%p725_p10), %s1071_s16  ;;  %s1099_s29 = smov (!%p725_p10), 0  }
 0x1e0   : > { %s947_s30 = smov (!%p725_p10), 0  }
 0x1e5 LB: >> { %v556_v44 = vld [vmem:[%s941_s26] sm:$0xff]  ;;  %v558_v45 = vld [vmem:[%s941_s26 + $0x8] sm:$0xff]  ;;  %v560_v46 = vld [vmem:[%s941_s26 + $0x10] sm:$0xff]  ;;  %s564_s6 = sadd.s32 1, %s945_s29  ;;  %s550_s30 = sadd.s32 1, %s949_s30   ;;  %s949_s30 = sphi %s947_s30, %s550_s30   ;;  %s945_s29 = sphi %s1099_s29, %s1142_s29   ;;  %s941_s26 = sphi %s1141_s26, %s569_s26   ;;  %s937_s21 = sphi %s1140_s21, %s570_s21  }
 0x1e6   : >> { %557 = vst [vmem:[%s937_s21] sm:$0xff] %v556_v44  ;;  %559 = vst [vmem:[%s937_s21 + $0x8] sm:$0xff] %v558_v45  ;;  %v562_v47 = vld [vmem:[%s941_s26 + $0x18] sm:$0xff]  ;;  %p565_p11 = scmp.ge.s32.totalorder %s564_s6, %s1090_s28  ;;  %p549_p12 = scmp.ge.s32.totalorder %s550_s30, %s1090_s28 }
 0x1e7   : >> { %561 = vst [vmem:[%s937_s21 + $0x10] sm:$0xff] %v560_v46  ;;  %563 = vst [vmem:[%s937_s21 + $0x18] sm:$0xff] %v562_v47 }
 0x1e8   : >> { %s1149_s6 = smov (%p565_p11, %s564_s6), 0  ;;  %552 = sbr.rel (!%p549_p12) target bundleno = 485 (0x1e5), region = 130 }
 0x1e9   : >> { %s726_s7 = sshll.u32 %s1149_s6, 5  ;;  %s1142_s29 = smov %s1149_s6 }
 0x1ea   : >> { %s569_s26 = scalar_lea.vmem %s1071_s16, %s726_s7 [#allocation2]   ;;  %s570_s21 = scalar_lea.vmem %s1084_s24, %s726_s7  }
 0x1ef PF: > { %s1115_s8 = sand.u32 3, %s1147_s18   ;;  %s737_s9 = sshll.u32 %s1090_s28, 5 }
 0x1f0   : > { %s575_s10 = scalar_lea.vmem %s1071_s16, %s737_s9 [#allocation2]   ;;  %s577_s11 = scalar_lea.vmem %s1084_s24, %s737_s9  }
 0x1f1   : > { %p731_p13 = scmp.le.s32.totalorder %s1115_s8, 0 }
 0x1f2   : > { %s951_s12 = smov (!%p731_p13), %s577_s11   ;;  %s955_s13 = smov (!%p731_p13), %s575_s10  }
 0x1f3   : > { %668 = sbr.rel (%p731_p13) target bundleno = 516 (0x204), region = 135  ;;  %s959_s14 = smov (!%p731_p13), 0  }
 0x1f4   : > { %s963_s15 = smov (!%p731_p13), 0  }
 0x1fa LB: >> { %v587_v48 = vld [vmem:[%s957_s13] sm:$0xff]  ;;  %s589_s18 = sadd.s32 1, %s961_s14  ;;  %s581_s15 = sadd.s32 1, %s965_s15   ;;  %s965_s15 = sphi %s963_s15, %s581_s15   ;;  %s961_s14 = sphi %s959_s14, %s960_s14   ;;  %s957_s13 = sphi %s955_s13, %s594_s13   ;;  %s953_s12 = sphi %s951_s12, %s595_s12  }
 0x1fb   : >> { %588 = vst [vmem:[%s953_s12] sm:$0xff] %v587_v48  ;;  %p590_p0 = scmp.ge.s32.totalorder %s589_s18, %s1115_s8  ;;  %p580_p1 = scmp.ge.s32.totalorder %s581_s15, %s1115_s8 }
 0x1fd   : >> { %s1151_s18 = smov (%p590_p0, %s589_s18), 0  ;;  %583 = sbr.rel (!%p580_p1) target bundleno = 506 (0x1fa), region = 141 }
 0x1fe   : >> { %s732_s16 = sshll.u32 %s1151_s18, 3  ;;  %s960_s14 = smov %s1151_s18  }
 0x1ff   : >> { %s594_s13 = scalar_lea.vmem %s575_s10, %s732_s16 [#allocation2]   ;;  %s595_s12 = scalar_lea.vmem %s577_s11, %s732_s16  }
 0x204 PF: > { %p12_p2 = scmp.ge.s32.totalorder %s1012_s22, 9   ;;  %s1143_s18 = smov %s929_s19 }
 0x205   : > { %s1144_s19 = smov %s1020_s25  ;;  %s1145_s20 = smov %s1012_s22 }
 0x206   :  { %14 = sbr.rel (!%p12_p2) target bundleno = 2 (0x2), region = 152 }

</bundles_post_ra>
